<compile_context>
chip_gen: v7x
topology: tpu7x:2x2x1
jax: 0.10.0
libtpu: 0.0.40
codegen_flags: <defaults>
</compile_context>

<pallas_src>
import functools
import math

import jax
import jax.numpy as jnp
from jax.experimental import pallas as pl
from jax.experimental.pallas import tpu as pltpu

_LANE = 128
_MASK_VALUE = -1e30  # finite additive mask for non-edges (bf16-representable)


def _round_up(x, m):
    return ((x + m - 1) // m) * m


def _default_vmem_limit_bytes():
    """Scoped-VMEM limit safe on v5e/v6e (128 MiB) and v7x (64 MiB physical)."""
    cap = 64 * 1024 * 1024
    try:
        info = pltpu.get_tpu_info()
        cap = int(getattr(info, "vmem_capacity_bytes", cap))
    except Exception:
        pass
    return int(max(min(cap - (16 << 20), 100 << 20), 32 << 20))


def _pick_tiles(n, vmem_limit):
    """Per-generation default agg tiles, clamped for small graphs."""
    n128 = _round_up(max(n, 1), _LANE)
    if vmem_limit >= (80 << 20):     # v5e / v6e: 128 MiB physical VMEM
        tr_d, tc_d = 512, 2048
    else:                            # v7x: 64 MiB physical VMEM
        tr_d, tc_d = 512, 1024
    if n128 <= tr_d and n128 <= tc_d:
        return n128, n128            # whole padded graph in a single tile
    # Powers-of-two x 128 so lcm(tile_rows, tile_cols) == max (cheap padding).
    def p2(cap):
        t = _LANE
        while t * 2 <= min(cap, n128):
            t *= 2
        return t
    return p2(tr_d), p2(tc_d)


# ----------------------------- Pallas kernels -----------------------------

def _gat_project_kernel(x_ref, w_aug_ref, xp_ref, att_ref, acc_sc, *, hp):
    """xp_aug = x @ [W | W@att_dst | W@att_src], K-tiled over f_in.

    bf16 MXU operands, f32 accumulator scratch.  Outputs (written on the last
    K step):
      xp_ref  (tm, hp)   bf16  projected node features (zero-padded lanes)
      att_ref (tm, 128)  f32   col 0 = <att_dst, xp_i>, col 1 = <att_src, xp_i>
    """
    k = pl.program_id(1)

    @pl.when(k == 0)
    def _init():
        acc_sc[...] = jnp.zeros(acc_sc.shape, dtype=jnp.float32)

    acc_sc[...] += jnp.dot(x_ref[...], w_aug_ref[...],
                           preferred_element_type=jnp.float32)

    @pl.when(k == pl.num_programs(1) - 1)
    def _finalize():
        res = acc_sc[...]                               # (tm, hp + 128)
        xp_ref[...] = res[:, :hp].astype(jnp.bfloat16)
        att_ref[...] = res[:, hp:]


def _gat_agg_kernel(occ_ref, a_dst_ref, a_src_ref, xp_ref, mask_ref, bias_ref,
                    o_ref, m_sc, l_sc, acc_sc, *, tile_cols, grid_cols,
                    xp_resident):
    """Online-softmax GAT aggregation over neighbour-column tiles (axis 1).

    occ_ref (SMEM, scalar-prefetched) holds per (row-tile, col-tile) edge
    occupancy; empty tiles skip the whole softmax/matmul body.
    """
    i = pl.program_id(0)
    k = pl.program_id(1)

    @pl.when(k == 0)
    def _init():
        m_sc[...] = jnp.full(m_sc.shape, -jnp.inf, dtype=jnp.float32)
        l_sc[...] = jnp.zeros(l_sc.shape, dtype=jnp.float32)
        acc_sc[...] = jnp.zeros(acc_sc.shape, dtype=jnp.float32)

    @pl.when(occ_ref[i * grid_cols + k] > 0)
    def _compute():
        if xp_resident:
            start = pl.multiple_of(k * tile_cols, tile_cols)
            xp_blk = xp_ref[pl.ds(start, tile_cols), :]   # (tn, hp) bf16
        else:
            xp_blk = xp_ref[...]                          # streamed block

        # e[i, j] = LeakyReLU(a_dst[i] + a_src[j]) + bias_mask[i, j]
        s = a_dst_ref[...] + a_src_ref[...]      # (tm,1)+(1,tn) -> (tm,tn) f32
        s = jnp.maximum(s, 0.2 * s)              # LeakyReLU(0.2), one VPU op
        s = s + mask_ref[...].astype(jnp.float32)

        m_prev = m_sc[...]
        m_new = jnp.maximum(m_prev, jnp.max(s, axis=-1, keepdims=True))
        corr = jnp.exp(m_prev - m_new)
        # Masked entries underflow to exactly 0 here — no second select needed.
        p = jnp.exp(s - m_new)
        l_sc[...] = corr * l_sc[...] + jnp.sum(p, axis=-1, keepdims=True)
        acc_sc[...] = corr * acc_sc[...] + jnp.dot(
            p.astype(jnp.bfloat16), xp_blk, preferred_element_type=jnp.float32)
        m_sc[...] = m_new

    @pl.when(k == pl.num_programs(1) - 1)
    def _finalize():
        inv_l = pl.reciprocal(l_sc[...], approx=True)    # EUP slot, ~free
        o_ref[...] = jnp.maximum(acc_sc[...] * inv_l + bias_ref[...],
                                 0.0).astype(o_ref.dtype)


def _mlp_tail_kernel(x_ref, w1_ref, b1_ref, w2_ref, b2_ref, o_ref):
    """Fused lin1 -> relu -> lin2 (bf16 MXU operands, f32 accumulate)."""
    h = jnp.dot(x_ref[...], w1_ref[...], preferred_element_type=jnp.float32)
    h = jnp.maximum(h + b1_ref[...], 0.0)
    y = jnp.dot(h.astype(jnp.bfloat16), w2_ref[...],
                preferred_element_type=jnp.float32)
    o_ref[...] = y + b2_ref[...]


# ------------------------------- wrappers ---------------------------------

def build_attn_bias(edge_index, n_pad):
    """Additive attention bias, bf16, shape (n_pad, n_pad).

    bias[i, j] = log(multiplicity of edge j->i)  (0 for one edge / self loop)
                 _MASK_VALUE                      where no edge exists
    GATConv(add_self_loops=True): existing self loops replaced by exactly one
    (also on padded rows, so every row is well defined).

    # TODO(synk): this dense [N,N] bias is O(N^2) HBM; a NELL-scale graph
    # needs a CSR / padded-neighbour layout with scalar-prefetched row
    # offsets + DMA gather instead of a dense mask.
    """
    src = edge_index[0]
    dst = edge_index[1]
    counts = jnp.zeros((n_pad, n_pad), jnp.float32).at[dst, src].add(1.0)
    eye = jnp.eye(n_pad, dtype=jnp.float32)
    counts = counts * (1.0 - eye) + eye
    bias = jnp.where(counts > 0,
                     jnp.log(jnp.maximum(counts, 1.0)),
                     jnp.float32(_MASK_VALUE))
    return bias.astype(jnp.bfloat16)


def build_tile_occupancy(edge_index, n_pad, tile_rows, tile_cols):
    """Flat int32 per (row-tile, col-tile) occupancy (1 if any edge/self loop)."""
    gr = n_pad // tile_rows
    gc = n_pad // tile_cols
    src = edge_index[0]
    dst = edge_index[1]
    occ = jnp.zeros((gr, gc), jnp.int32)
    occ = occ.at[dst // tile_rows, src // tile_cols].set(1)
    diag = jnp.arange(n_pad, dtype=jnp.int32)
    occ = occ.at[diag // tile_rows, diag // tile_cols].set(1)   # self loops
    return occ.reshape(-1)


def gat_layer(x_pad, w, att_src, att_dst, bias, attn_bias, occ_flat, *,
              tile_rows, tile_cols, vmem_limit):
    n_pad, f_in_pad = x_pad.shape
    f_in, h = w.shape
    hp = _round_up(h, _LANE)
    grid_rows = n_pad // tile_rows
    grid_cols = n_pad // tile_cols

    # K tile for the projection (bounds VMEM at large f_in, e.g. NELL).
    tk = _LANE
    for cand in (512, 256, 128):
        if f_in_pad % cand == 0:
            tk = cand
            break
    grid_k = f_in_pad // tk

    # Fold the attention vectors into the projection matmul as extra columns.
    w_dst = (w @ att_dst.reshape(h)).reshape(f_in)
    w_src = (w @ att_src.reshape(h)).reshape(f_in)
    w_aug = jnp.zeros((f_in_pad, hp + _LANE), jnp.float32)
    w_aug = w_aug.at[:f_in, :h].set(w)
    w_aug = w_aug.at[:f_in, hp].set(w_dst)
    w_aug = w_aug.at[:f_in, hp + 1].set(w_src)
    w_aug = w_aug.astype(jnp.bfloat16)                  # pre-cast once
    bias_pad = jnp.zeros((1, hp), jnp.float32).at[0, :h].set(bias.reshape(h))

    xp, att_cols = pl.pallas_call(
        functools.partial(_gat_project_kernel, hp=hp),
        out_shape=(jax.ShapeDtypeStruct((n_pad, hp), jnp.bfloat16),
                   jax.ShapeDtypeStruct((n_pad, _LANE), jnp.float32)),
        grid_spec=pltpu.PrefetchScalarGridSpec(
            num_scalar_prefetch=0,
            grid=(grid_rows, grid_k),
            in_specs=[pl.BlockSpec((tile_rows, tk), lambda i, k: (i, k)),
                      pl.BlockSpec((tk, hp + _LANE), lambda i, k: (k, 0))],
            out_specs=[pl.BlockSpec((tile_rows, hp), lambda i, k: (i, 0)),
                       pl.BlockSpec((tile_rows, _LANE), lambda i, k: (i, 0))],
            scratch_shapes=[pltpu.VMEM((tile_rows, hp + _LANE), jnp.float32)]),
        compiler_params=pltpu.CompilerParams(
            dimension_semantics=("parallel", "arbitrary"),
            vmem_limit_bytes=vmem_limit),
    )(x_pad, w_aug)

    a_dst = att_cols[:, 0:1]       # (n_pad, 1): sublane-aligned for row tiles
    a_src_t = att_cols[:, 1:2].T   # (1, n_pad): lane-aligned for column tiles

    # Keep xp fully VMEM-resident when it fits (double-buffered bf16 block
    # plus the streamed bias tile, f32 s/p temporaries and output/scratch).
    mask_bytes = 2 * tile_rows * tile_cols * 2            # bf16, 2 buffers
    temp_bytes = 2 * 4 * tile_rows * tile_cols            # f32 s and p temps
    misc_bytes = tile_rows * hp * (4 + 2 * 2) + (2 << 20)  # scratch/out/margin
    xp_res_bytes = 2 * n_pad * hp * 2                     # bf16, 2 buffers
    xp_resident = (mask_bytes + temp_bytes + misc_bytes
                   + xp_res_bytes) <= vmem_limit

    if xp_resident:
        xp_spec = pl.BlockSpec((n_pad, hp), lambda i, k, occ: (0, 0))
    else:
        xp_spec = pl.BlockSpec((tile_cols, hp), lambda i, k, occ: (k, 0))

    out = pl.pallas_call(
        functools.partial(_gat_agg_kernel, tile_cols=tile_cols,
                          grid_cols=grid_cols, xp_resident=xp_resident),
        out_shape=jax.ShapeDtypeStruct((n_pad, hp), jnp.bfloat16),
        grid_spec=pltpu.PrefetchScalarGridSpec(
            num_scalar_prefetch=1,
            grid=(grid_rows, grid_cols),
            in_specs=[pl.BlockSpec((tile_rows, 1), lambda i, k, occ: (i, 0)),
                      pl.BlockSpec((1, tile_cols), lambda i, k, occ: (0, k)),
                      xp_spec,
                      pl.BlockSpec((tile_rows, tile_cols),
                                   lambda i, k, occ: (i, k)),
                      pl.BlockSpec((1, hp), lambda i, k, occ: (0, 0))],
            out_specs=pl.BlockSpec((tile_rows, hp), lambda i, k, occ: (i, 0)),
            scratch_shapes=[pltpu.VMEM((tile_rows, 1), jnp.float32),
                            pltpu.VMEM((tile_rows, 1), jnp.float32),
                            pltpu.VMEM((tile_rows, hp), jnp.float32)]),
        compiler_params=pltpu.CompilerParams(
            dimension_semantics=("parallel", "arbitrary"),
            vmem_limit_bytes=vmem_limit),
    )(occ_flat, a_dst, a_src_t, xp, attn_bias, bias_pad)
    return out


def mlp_tail(x_pad, lw1, lb1, lw2, lb2, *, tile_rows, vmem_limit):
    n_pad, h1p = x_pad.shape
    h1, h2 = lw1.shape
    _, c = lw2.shape
    h2p = _round_up(h2, _LANE)
    cp = _round_up(c, _LANE)
    w1p = jnp.zeros((h1p, h2p), jnp.float32).at[:h1, :h2].set(lw1)
    w1p = w1p.astype(jnp.bfloat16)
    b1p = jnp.zeros((1, h2p), jnp.float32).at[0, :h2].set(lb1.reshape(h2))
    w2p = jnp.zeros((h2p, cp), jnp.float32).at[:h2, :c].set(lw2)
    w2p = w2p.astype(jnp.bfloat16)
    b2p = jnp.zeros((1, cp), jnp.float32).at[0, :c].set(lb2.reshape(c))
    grid_rows = n_pad // tile_rows
    return pl.pallas_call(
        _mlp_tail_kernel,
        out_shape=jax.ShapeDtypeStruct((n_pad, cp), jnp.float32),
        grid_spec=pltpu.PrefetchScalarGridSpec(
            num_scalar_prefetch=0,
            grid=(grid_rows,),
            in_specs=[pl.BlockSpec((tile_rows, h1p), lambda i: (i, 0)),
                      pl.BlockSpec((h1p, h2p), lambda i: (0, 0)),
                      pl.BlockSpec((1, h2p), lambda i: (0, 0)),
                      pl.BlockSpec((h2p, cp), lambda i: (0, 0)),
                      pl.BlockSpec((1, cp), lambda i: (0, 0))],
            out_specs=pl.BlockSpec((tile_rows, cp), lambda i: (i, 0))),
        compiler_params=pltpu.CompilerParams(
            dimension_semantics=("parallel",),
            vmem_limit_bytes=vmem_limit),
    )(x_pad, w1p, b1p, w2p, b2p)


def mlp_forward(x, edge_index, params, *, tile_rows=None, tile_cols=None):
    """Eval-mode forward pass of the MLP module (dropout == identity)."""
    n, f_in = x.shape
    num_classes = params["lw2"].shape[1]
    vmem_limit = _default_vmem_limit_bytes()

    auto_r, auto_c = _pick_tiles(n, vmem_limit)
    tile_rows = auto_r if tile_rows is None else tile_rows
    tile_cols = auto_c if tile_cols is None else tile_cols

    n_pad = _round_up(n, math.lcm(tile_rows, tile_cols))
    f_in_pad = _round_up(f_in, 512 if f_in > 512 else _LANE)

    x_pad = jnp.zeros((n_pad, f_in_pad), jnp.bfloat16)
    x_pad = x_pad.at[:n, :f_in].set(x.astype(jnp.bfloat16))
    attn_bias = build_attn_bias(edge_index, n_pad)
    occ_flat = build_tile_occupancy(edge_index, n_pad, tile_rows, tile_cols)

    kw = dict(tile_rows=tile_rows, tile_cols=tile_cols, vmem_limit=vmem_limit)
    # conv1 -> relu   (dropout: identity in eval)
    h = gat_layer(x_pad, params["w1"], params["att_src1"], params["att_dst1"],
                  params["b1"], attn_bias, occ_flat, **kw)
    # conv2 -> relu
    h = gat_layer(h, params["w2"], params["att_src2"], params["att_dst2"],
                  params["b2"], attn_bias, occ_flat, **kw)
    # lin1 -> relu -> lin2 (fused)
    logits = mlp_tail(h, params["lw1"], params["lb1"], params["lw2"],
                      params["lb2"], tile_rows=tile_rows,
                      vmem_limit=vmem_limit)
    return logits[:n, :num_classes]


def init_params(key, num_features, hidden_channels, num_classes):
    h0, h1, h2 = hidden_channels
    ks = jax.random.split(key, 10)

    def glorot(k, shape):
        fan_in, fan_out = shape[0], shape[1]
        limit = (6.0 / (fan_in + fan_out)) ** 0.5
        return jax.random.uniform(k, shape, jnp.float32, -limit, limit)

    return {
        # GATConv 1:  num_features -> h0
        "w1": glorot(ks[0], (num_features, h0)),
        "att_src1": glorot(ks[1], (1, h0)),
        "att_dst1": glorot(ks[2], (1, h0)),
        "b1": jnp.zeros((1, h0), jnp.float32),
        # GATConv 2:  h0 -> h1
        "w2": glorot(ks[3], (h0, h1)),
        "att_src2": glorot(ks[4], (1, h1)),
        "att_dst2": glorot(ks[5], (1, h1)),
        "b2": jnp.zeros((1, h1), jnp.float32),
        # Linear 1:  h1 -> h2   (stored as W^T of torch Linear)
        "lw1": glorot(ks[6], (h1, h2)),
        "lb1": jnp.zeros((1, h2), jnp.float32),
        # Linear 2:  h2 -> num_classes
        "lw2": glorot(ks[7], (h2, num_classes)),
        "lb2": jnp.zeros((1, num_classes), jnp.float32),
    }


def reference_forward(x, edge_index, params):
    """Pure-JAX f32 reference of the same eval-mode forward pass."""
    n = x.shape[0]
    src, dst = edge_index[0], edge_index[1]
    counts = jnp.zeros((n, n), jnp.float32).at[dst, src].add(1.0)
    eye = jnp.eye(n, dtype=jnp.float32)
    counts = counts * (1.0 - eye) + eye
    logc = jnp.where(counts > 0, jnp.log(jnp.maximum(counts, 1.0)), -jnp.inf)

    def gat(xin, w, a_src, a_dst, b):
        xp = xin @ w
        ad = xp @ a_dst.reshape(-1)
        asr = xp @ a_src.reshape(-1)
        e = ad[:, None] + asr[None, :]
        e = jnp.where(e > 0, e, 0.2 * e)
        alpha = jax.nn.softmax(e + logc, axis=1)
        return alpha @ xp + b.reshape(1, -1)

    h = jax.nn.relu(gat(x, params["w1"], params["att_src1"],
                        params["att_dst1"], params["b1"]))
    h = jax.nn.relu(gat(h, params["w2"], params["att_src2"],
                        params["att_dst2"], params["b2"]))
    h = jax.nn.relu(h @ params["lw1"] + params["lb1"].reshape(1, -1))
    return h @ params["lw2"] + params["lb2"].reshape(1, -1)


if __name__ == "__main__":
    # Small synthetic graph standing in for the NELL dataset.  Run once with
    # the auto-picked (large) tiles and once with forced 128x128 tiles so the
    # multi-tile online-softmax / tile-skip path is exercised, and validate
    # both against a pure-JAX f32 reference.
    NUM_NODES = 200
    NUM_FEATURES = 64
    HIDDEN = (32, 32, 16)
    NUM_CLASSES = 8
    NUM_EDGES = 800

    key = jax.random.PRNGKey(0)
    k_x, k_src, k_dst, k_params = jax.random.split(key, 4)

    x = jax.random.normal(k_x, (NUM_NODES, NUM_FEATURES), jnp.float32)
    src = jax.random.randint(k_src, (NUM_EDGES,), 0, NUM_NODES, jnp.int32)
    dst = jax.random.randint(k_dst, (NUM_EDGES,), 0, NUM_NODES, jnp.int32)
    edge_index = jnp.stack([src, dst], axis=0)          # (2, E)

    params = init_params(k_params, NUM_FEATURES, HIDDEN, NUM_CLASSES)

    out = mlp_forward(x, edge_index, params)            # auto (large) tiles
    out_small = mlp_forward(x, edge_index, params,      # forced 128x128 tiles
                            tile_rows=128, tile_cols=128)
    jax.block_until_ready(out)
    jax.block_until_ready(out_small)

    assert out.shape == (NUM_NODES, NUM_CLASSES), out.shape
    assert out.dtype == jnp.float32
    assert bool(jnp.all(jnp.isfinite(out)))
    assert bool(jnp.all(jnp.isfinite(out_small)))

    out_ref = reference_forward(x, edge_index, params)
    scale = float(jnp.max(jnp.abs(out_ref))) + 1.0
    err_ref = float(jnp.max(jnp.abs(out - out_ref)))
    err_tiles = float(jnp.max(jnp.abs(out - out_small)))
    # Generous tolerances: the kernels use bf16 MXU operands by design.
    assert err_ref <= 0.1 * scale, (err_ref, scale)
    assert err_tiles <= 0.05 * scale, (err_tiles, scale)

    print("KERNEL_OK")
</pallas_src>

<mosaic_0001>
module attributes {stable_mosaic.version = 11 : i64} {
  func.func @_gat_project_kernel(%arg0: i32, %arg1: i32, %arg2: memref<256x128xbf16, #tpu.memory_space<vmem>>, %arg3: memref<128x256xbf16, #tpu.memory_space<vmem>>, %arg4: memref<256x128xbf16, #tpu.memory_space<vmem>>, %arg5: memref<256x128xf32, #tpu.memory_space<vmem>>, %arg6: memref<256x256xf32, #tpu.memory_space<vmem>>) attributes {dimension_semantics = [#tpu.dimension_semantics<parallel>, #tpu.dimension_semantics<arbitrary>], iteration_bounds = array<i64: 1, 1>, scalar_prefetch = 0 : i64, scratch_operands = 1 : i64, tpu.core_type = #tpu.core_type<tc>, window_params = [{transform_indices = @transform_0, window_bounds = array<i64: 256, 128>}, {transform_indices = @transform_1, window_bounds = array<i64: 128, 256>}, {transform_indices = @transform_2, window_bounds = array<i64: 256, 128>}, {transform_indices = @transform_3, window_bounds = array<i64: 256, 128>}]} {
    %c0_i32 = arith.constant 0 : i32
    %0 = arith.cmpi eq, %arg1, %c0_i32 : i32
    %1 = arith.extui %0 : i1 to i32
    %c0_i32_0 = arith.constant 0 : i32
    %2 = arith.cmpi ne, %1, %c0_i32_0 : i32
    scf.if %2 {
      %cst_10 = arith.constant 0.000000e+00 : f32
      %12 = vector.broadcast %cst_10 : f32 to vector<256x256xf32>
      %c0_11 = arith.constant 0 : index
      %c0_12 = arith.constant 0 : index
      %13 = vector.load %arg6[%c0_11, %c0_12] : memref<256x256xf32, #tpu.memory_space<vmem>>, vector<256x256xf32>
      tpu.vector_store %arg6[%c0_11, %c0_12], %12 {strides = array<i32>} : memref<256x256xf32, #tpu.memory_space<vmem>>, vector<256x256xf32>,
    } else {
    }
    %c0 = arith.constant 0 : index
    %c0_1 = arith.constant 0 : index
    %3 = vector.load %arg6[%c0, %c0_1] : memref<256x256xf32, #tpu.memory_space<vmem>>, vector<256x256xf32>
    %c0_2 = arith.constant 0 : index
    %c0_3 = arith.constant 0 : index
    %4 = vector.load %arg2[%c0_2, %c0_3] : memref<256x128xbf16, #tpu.memory_space<vmem>>, vector<256x128xbf16>
    %c0_4 = arith.constant 0 : index
    %c0_5 = arith.constant 0 : index
    %5 = vector.load %arg3[%c0_4, %c0_5] : memref<128x256xbf16, #tpu.memory_space<vmem>>, vector<128x256xbf16>
    %cst = arith.constant dense<0.000000e+00> : vector<256x256xf32>
    %6 = tpu.matmul %4, %5, %cst {dimension_numbers = #tpu.dot_dimension_numbers<[1], [0], [0], [1], [0, 0, 1, 1], [], []>} : vector<256x128xbf16>, vector<128x256xbf16>, vector<256x256xf32> -> vector<256x256xf32>
    %7 = arith.addf %3, %6 : vector<256x256xf32>
    %c0_6 = arith.constant 0 : index
    %c0_7 = arith.constant 0 : index
    %8 = vector.load %arg6[%c0_6, %c0_7] : memref<256x256xf32, #tpu.memory_space<vmem>>, vector<256x256xf32>
    tpu.vector_store %arg6[%c0_6, %c0_7], %7 {strides = array<i32>} : memref<256x256xf32, #tpu.memory_space<vmem>>, vector<256x256xf32>,
    %c0_i32_8 = arith.constant 0 : i32
    %9 = arith.cmpi eq, %arg1, %c0_i32_8 : i32
    %10 = arith.extui %9 : i1 to i32
    %c0_i32_9 = arith.constant 0 : i32
    %11 = arith.cmpi ne, %10, %c0_i32_9 : i32
    scf.if %11 {
      %c0_10 = arith.constant 0 : index
      %c0_11 = arith.constant 0 : index
      %12 = vector.load %arg6[%c0_10, %c0_11] : memref<256x256xf32, #tpu.memory_space<vmem>>, vector<256x256xf32>
      %13 = vector.extract_strided_slice %12 {offsets = [0, 0], sizes = [256, 128], strides = [1, 1]} : vector<256x256xf32> to vector<256x128xf32>
      %14 = arith.truncf %13 : vector<256x128xf32> to vector<256x128xbf16>
      %c0_12 = arith.constant 0 : index
      %c0_13 = arith.constant 0 : index
      %15 = vector.load %arg4[%c0_12, %c0_13] : memref<256x128xbf16, #tpu.memory_space<vmem>>, vector<256x128xbf16>
      tpu.vector_store %arg4[%c0_12, %c0_13], %14 {strides = array<i32>} : memref<256x128xbf16, #tpu.memory_space<vmem>>, vector<256x128xbf16>,
      %16 = vector.extract_strided_slice %12 {offsets = [0, 128], sizes = [256, 128], strides = [1, 1]} : vector<256x256xf32> to vector<256x128xf32>
      %c0_14 = arith.constant 0 : index
      %c0_15 = arith.constant 0 : index
      %17 = vector.load %arg5[%c0_14, %c0_15] : memref<256x128xf32, #tpu.memory_space<vmem>>, vector<256x128xf32>
      tpu.vector_store %arg5[%c0_14, %c0_15], %16 {strides = array<i32>} : memref<256x128xf32, #tpu.memory_space<vmem>>, vector<256x128xf32>,
    } else {
    }
    return
  }
  func.func @transform_0(%arg0: i32, %arg1: i32) -> (i32, i32) {
    %c0_i32 = arith.constant 0 : i32
    return %arg0, %arg1 : i32, i32
  }
  func.func @transform_1(%arg0: i32, %arg1: i32) -> (i32, i32) {
    %c0_i32 = arith.constant 0 : i32
    %c0_i32_0 = arith.constant 0 : i32
    return %arg1, %c0_i32 : i32, i32
  }
  func.func @transform_2(%arg0: i32, %arg1: i32) -> (i32, i32) {
    %c0_i32 = arith.constant 0 : i32
    %c0_i32_0 = arith.constant 0 : i32
    return %arg0, %c0_i32 : i32, i32
  }
  func.func @transform_3(%arg0: i32, %arg1: i32) -> (i32, i32) {
    %c0_i32 = arith.constant 0 : i32
    %c0_i32_0 = arith.constant 0 : i32
    return %arg0, %c0_i32 : i32, i32
  }
}

</mosaic_0001>

<bundles_post_ra>
// kernel: tpu_custom_call.1
= control target key start
LH: loop header
LB: loop body
LE: loop exit
PB: predicated region body
PF: predicated region fallthrough
CT: control target
= control target key end

     0   :  { %9 = vsyncpa [#allocation4], 0  ;;  %s1478_s0 = inlined_call_operand.hbm [shape: bf16[256,128], index: 0, kind: input, shape index: {}]   ;;  %s1479_s1 = inlined_call_operand.hbm [shape: bf16[128,256], index: 1, kind: input, shape index: {}]   ;;  %s1480_s2 = inlined_call_operand.hbm [shape: bf16[256,128], index: 2, kind: output, shape index: {0}]   ;;  %s1481_s3 = inlined_call_operand.hbm [shape: f32[256,128], index: 3, kind: output, shape index: {1}]  }
   0x1   :  { %10 = vsyncpa [#allocation7], 0 }
   0x2   :  { %11 = vsyncpa [#allocation5], 0 }
   0x3   :  { %12 = vsyncpa [#allocation10], 0  ;;  %s1366_s12 = smov [#allocation3]   ;;  %s1270_s16 = scalar_lea.hbm %s1478_s0, 2048 }
   0x4   :  { %s18_s13 = sshll.u32 %s1366_s12, 4  ;;  %p1271_p0 = scmp.ne.s32.totalorder %s1478_s0, %s1270_s16  ;;  %s19_s13 = int_to_ptr.vmem [resolvable:$true] %s18_s13 }
   0x5   :  { %p1274_p1 = scmp.lt.u32.totalorder %s1270_s16, %s1478_s0 }
   0x7   :  { %p1276_p2 = pnand %p1274_p1, %p1271_p0 }
   0x9   :  { %1279 = shalt.err (!%p1276_p2)
}
   0xa   :  { %s1280_s21 = scalar_lea.vmem %s19_s13, 2048  ;;  %p1285_p4 = scmp.lt.s32.totalorder %s19_s13, %s19_s13 }
   0xb   :  { %p1281_p3 = scmp.ne.s32.totalorder %s19_s13, %s1280_s21  ;;  %p1286_p5 = scmp.lt.s32.totalorder %s1280_s21, %s1280_s21 }
   0xd   :  { %p1287_p6 = por %p1286_p5, %p1285_p4 }
   0xf   :  { %p1288_p7 = pnand %p1287_p6, %p1281_p3 }
  0x11   :  { %1291 = shalt.err (!%p1288_p7)
}
  0x12   :  { %s1367_s22 = smov 64   ;;  %s1368_s23 = smov 4  }
  0x13   :  { %24 = dma.hbm_to_vmem [thread:$0]  %s1478_s0, 2048, %s19_s13, [#allocation4], %s1367_s22, %s1367_s22, %s1368_s23  }
  0x14   :  { %s1369_s26 = smov [#allocation6]   ;;  %s1292_s30 = scalar_lea.hbm %s1479_s1, 2048 }
  0x15   :  { %s30_s27 = sshll.u32 %s1369_s26, 4  ;;  %p1293_p8 = scmp.ne.s32.totalorder %s1479_s1, %s1292_s30  ;;  %s31_s27 = int_to_ptr.vmem [resolvable:$true] %s30_s27 }
  0x16   :  { %p1296_p9 = scmp.lt.u32.totalorder %s1292_s30, %s1479_s1 }
  0x18   :  { %p1298_p10 = pnand %p1296_p9, %p1293_p8 }
  0x1a   :  { %1301 = shalt.err (!%p1298_p10)
}
  0x1b   :  { %s1302_s8 = scalar_lea.vmem %s31_s27, 2048  ;;  %p1307_p12 = scmp.lt.s32.totalorder %s31_s27, %s31_s27 }
  0x1c   :  { %p1303_p11 = scmp.ne.s32.totalorder %s31_s27, %s1302_s8  ;;  %p1308_p13 = scmp.lt.s32.totalorder %s1302_s8, %s1302_s8 }
  0x1e   :  { %p1309_p0 = por %p1308_p13, %p1307_p12 }
  0x20   :  { %p1310_p1 = pnand %p1309_p0, %p1303_p11 }
  0x22   :  { %1313 = shalt.err (!%p1310_p1)
}
  0x23   :  { %s1370_s0 = smov 128   ;;  %s1371_s9 = smov 8  }
  0x24   :  { %36 = dma.hbm_to_vmem [thread:$0]  %s1479_s1, 2048, %s31_s27, [#allocation7], %s1370_s0, %s1370_s0, %s1371_s9  }
  0x25   :  { %1358 = dma.done.wait [#allocation4], 2048  }
  0x26   :  { %1359 = vsyncadd [#allocation4], 4294965248 }
  0x27   :  { %1360 = dma.done.wait [#allocation7], 2048  }
  0x28   :  { %1361 = vsyncadd [#allocation7], 4294965248  ;;  %v1372_v0 = vmov 0   ;;  %v1230_v1 = vld [vmem:[#allocation6 + $0x4] ss:$8 sps:$4 sm:$0xff]   ;;  %v1258_v21 = vld [vmem:[#allocation3 + $0x10] sm:$0xff]  }
  0x29   :  { %432 = vmatprep.mubr.bf16.mxu0 %v1372_v0  ;;  %512 = vmatprep.mubr.bf16.mxu1 %v1372_v0  ;;  %v1232_v2 = vld [vmem:[#allocation6] ss:$8 sps:$4 sm:$0xff]   ;;  %v1233_v3 = vld [vmem:[#allocation6 + $0x14] ss:$8 sps:$4 sm:$0xff]   ;;  %v1235_v4 = vld [vmem:[#allocation6 + $0x10] ss:$8 sps:$4 sm:$0xff]  }
  0x2a   :  { %400 = vmatprep.subr.bf16.mxu0 %v1230_v1  ;;  %1205 = vmatprep.subr.bf16.mxu1 %v1230_v1  ;;  %v1236_v5 = vld [vmem:[#allocation6 + $0x24] ss:$8 sps:$4 sm:$0xff]   ;;  %v1238_v6 = vld [vmem:[#allocation6 + $0x20] ss:$8 sps:$4 sm:$0xff]   ;;  %v1239_v7 = vld [vmem:[#allocation6 + $0x34] ss:$8 sps:$4 sm:$0xff]  }
  0x2b   :  { %401 = vmatpush1.bf16.msra.mxu0 %v1232_v2  ;;  %1213 = vmatpush1.bf16.msra.mxu1 %v1232_v2  ;;  %v1241_v8 = vld [vmem:[#allocation6 + $0x30] ss:$8 sps:$4 sm:$0xff]   ;;  %v1242_v9 = vld [vmem:[#allocation6 + $0x44] ss:$8 sps:$4 sm:$0xff]   ;;  %v1244_v10 = vld [vmem:[#allocation6 + $0x40] ss:$8 sps:$4 sm:$0xff]  }
  0x2c   :  { %402 = vmatprep.subr.bf16.mxu0 %v1233_v3  ;;  %1206 = vmatprep.subr.bf16.mxu1 %v1233_v3  ;;  %v1245_v11 = vld [vmem:[#allocation6 + $0x54] ss:$8 sps:$4 sm:$0xff]   ;;  %v1247_v12 = vld [vmem:[#allocation6 + $0x50] ss:$8 sps:$4 sm:$0xff]   ;;  %v1248_v13 = vld [vmem:[#allocation6 + $0x64] ss:$8 sps:$4 sm:$0xff]  }
  0x2d   :  { %v1250_v14 = vld [vmem:[#allocation6 + $0x60] ss:$8 sps:$4 sm:$0xff]   ;;  %v1251_v15 = vld [vmem:[#allocation6 + $0x74] ss:$8 sps:$4 sm:$0xff]   ;;  %v1253_v16 = vld [vmem:[#allocation6 + $0x70] ss:$8 sps:$4 sm:$0xff]  }
  0x2e   :  { %v1254_v17 = vld [vmem:[#allocation3] sm:$0xff]   ;;  %v1256_v19 = vld [vmem:[#allocation3 + $0x8] sm:$0xff]   ;;  %v1259_v22 = vld [vmem:[#allocation3 + $0x50] sm:$0xff]   ;;  %s1373_s1 = smov [#allocation9]   ;;  %s1374_s13 = smov [#allocation8]  }
  0x2f   :  { %403 = vmatpush1.bf16.msra.mxu0 %v1235_v4  ;;  %1214 = vmatpush1.bf16.msra.mxu1 %v1235_v4  ;;  %v1255_v18 = vld [vmem:[#allocation3 + $0x40] sm:$0xff]   ;;  %v1257_v20 = vld [vmem:[#allocation3 + $0x48] sm:$0xff]   ;;  %v1260_v23 = vld [vmem:[#allocation3 + $0x18] sm:$0xff]   ;;  %s997_s12 = sshll.u32 %s1373_s1, 4  ;;  %s985_s14 = sshll.u32 %s1374_s13, 4  ;;  %s998_s12 = int_to_ptr.vmem [resolvable:$true] %s997_s12  ;;  %s1441_s14 = int_to_ptr.vmem [resolvable:$true] %s985_s14 }
  0x30   :  { %404 = vmatprep.subr.bf16.mxu0 %v1236_v5  ;;  %1207 = vmatprep.subr.bf16.mxu1 %v1236_v5  ;;  %v1261_v24 = vld [vmem:[#allocation3 + $0x58] sm:$0xff]   ;;  %v1262_v25 = vld [vmem:[#allocation3 + $0x20] sm:$0xff]   ;;  %v1264_v27 = vld [vmem:[#allocation3 + $0x28] sm:$0xff]   ;;  %s1314_s15 = scalar_lea.vmem %s998_s12, 4096  ;;  %p1319_p3 = scmp.lt.s32.totalorder %s998_s12, %s998_s12 }
  0x31   :  { %v1263_v26 = vld [vmem:[#allocation3 + $0x60] sm:$0xff]   ;;  %v1265_v28 = vld [vmem:[#allocation3 + $0x68] sm:$0xff]   ;;  %v1266_v29 = vld [vmem:[#allocation3 + $0x30] sm:$0xff]   ;;  %p1315_p2 = scmp.ne.s32.totalorder %s998_s12, %s1314_s15  ;;  %p1320_p4 = scmp.lt.s32.totalorder %s1314_s15, %s1314_s15 }
  0x32   :  { %v1267_v30 = vld [vmem:[#allocation3 + $0x70] sm:$0xff]   ;;  %v1268_v31 = vld [vmem:[#allocation3 + $0x38] sm:$0xff]  }
  0x33   :  { %405 = vmatpush1.bf16.msra.mxu0 %v1238_v6  ;;  %1215 = vmatpush1.bf16.msra.mxu1 %v1238_v6  ;;  %v1269_v32 = vld [vmem:[#allocation3 + $0x78] sm:$0xff]   ;;  %p1321_p5 = por %p1320_p4, %p1319_p3 }
  0x34   :  { %406 = vmatprep.subr.bf16.mxu0 %v1239_v7  ;;  %1208 = vmatprep.subr.bf16.mxu1 %v1239_v7 }
  0x35   :  { %p1322_p6 = pnand %p1321_p5, %p1315_p2 }
  0x37   :  { %407 = vmatpush1.bf16.msra.mxu0 %v1241_v8  ;;  %1216 = vmatpush1.bf16.msra.mxu1 %v1241_v8 }
  0x38   :  { %408 = vmatprep.subr.bf16.mxu0 %v1242_v9  ;;  %1209 = vmatprep.subr.bf16.mxu1 %v1242_v9 }
  0x3b   :  { %409 = vmatpush1.bf16.msra.mxu0 %v1244_v10  ;;  %1217 = vmatpush1.bf16.msra.mxu1 %v1244_v10 }
  0x3c   :  { %410 = vmatprep.subr.bf16.mxu0 %v1245_v11  ;;  %1210 = vmatprep.subr.bf16.mxu1 %v1245_v11 }
  0x3f   :  { %411 = vmatpush1.bf16.msra.mxu0 %v1247_v12  ;;  %1218 = vmatpush1.bf16.msra.mxu1 %v1247_v12 }
  0x40   :  { %412 = vmatprep.subr.bf16.mxu0 %v1248_v13  ;;  %1211 = vmatprep.subr.bf16.mxu1 %v1248_v13 }
  0x43   :  { %413 = vmatpush1.bf16.msra.mxu0 %v1250_v14  ;;  %1219 = vmatpush1.bf16.msra.mxu1 %v1250_v14 }
  0x44   :  { %414 = vmatprep.subr.bf16.mxu0 %v1251_v15  ;;  %1212 = vmatprep.subr.bf16.mxu1 %v1251_v15 }
  0x47   :  { %415 = vmatpush1.bf16.msra.mxu0 %v1253_v16  ;;  %1220 = vmatpush1.bf16.msra.mxu1 %v1253_v16 }
  0x4a   :  { %433 = vmatmul.mubr.bf16.vlgmr.msra.gmra.mrb[0].mxu0 %v1254_v17  ;;  %513 = vmatmul.mubr.bf16.vlgmr.msra.gmra.mrb[0].mxu1 %v1255_v18 }
  0x4b   :  { %442 = vmatprep.mubr.bf16.mxu0 %v1372_v0  ;;  %522 = vmatprep.mubr.bf16.mxu1 %v1372_v0 }
  0x52   :  { %443 = vmatmul.mubr.bf16.gmra.mrb[4].mxu0 %v1256_v19  ;;  %523 = vmatmul.mubr.bf16.gmra.mrb[4].mxu1 %v1257_v20 }
  0x53   :  { %452 = vmatprep.mubr.bf16.mxu0 %v1372_v0  ;;  %532 = vmatprep.mubr.bf16.mxu1 %v1372_v0 }
  0x5a   :  { %453 = vmatmul.mubr.bf16.gmra.mrb[8].mxu0 %v1258_v21  ;;  %533 = vmatmul.mubr.bf16.gmra.mrb[8].mxu1 %v1259_v22 }
  0x5b   :  { %462 = vmatprep.mubr.bf16.mxu0 %v1372_v0  ;;  %542 = vmatprep.mubr.bf16.mxu1 %v1372_v0 }
  0x62   :  { %463 = vmatmul.mubr.bf16.gmra.mrb[12].mxu0 %v1260_v23  ;;  %543 = vmatmul.mubr.bf16.gmra.mrb[12].mxu1 %v1261_v24 }
  0x63   :  { %472 = vmatprep.mubr.bf16.mxu0 %v1372_v0  ;;  %552 = vmatprep.mubr.bf16.mxu1 %v1372_v0 }
  0x6a   :  { %473 = vmatmul.mubr.bf16.gmra.mrb[16].mxu0 %v1262_v25  ;;  %553 = vmatmul.mubr.bf16.gmra.mrb[16].mxu1 %v1263_v26 }
  0x6b   :  { %482 = vmatprep.mubr.bf16.mxu0 %v1372_v0  ;;  %562 = vmatprep.mubr.bf16.mxu1 %v1372_v0 }
  0x72   :  { %483 = vmatmul.mubr.bf16.gmra.mrb[20].mxu0 %v1264_v27  ;;  %563 = vmatmul.mubr.bf16.gmra.mrb[20].mxu1 %v1265_v28 }
  0x73   :  { %492 = vmatprep.mubr.bf16.mxu0 %v1372_v0  ;;  %572 = vmatprep.mubr.bf16.mxu1 %v1372_v0 }
  0x7a   :  { %493 = vmatmul.mubr.bf16.gmra.mrb[24].mxu0 %v1266_v29  ;;  %573 = vmatmul.mubr.bf16.gmra.mrb[24].mxu1 %v1267_v30 }
  0x7b   :  { %502 = vmatprep.mubr.bf16.mxu0 %v1372_v0  ;;  %582 = vmatprep.mubr.bf16.mxu1 %v1372_v0 }
  0x82   :  { %503 = vmatmul.mubr.bf16.gmra.mrb[28].mxu0 %v1268_v31  ;;  %583 = vmatmul.mubr.bf16.gmra.mrb[28].mxu1 %v1269_v32 }
 0x11d   :  { %v434_v33 = vpop.f32.mrb[0].mxu0  ;;  %v514_v34 = vpop.f32.mrb[0].mxu1 }
 0x11e   :  { %v436_v35 = vpop.f32.mrb[1].mxu0  ;;  %v516_v36 = vpop.f32.mrb[1].mxu1 }
 0x11f   :  { %948 = vst [vmem:[#allocation9] sm:$0xff] %v436_v35  ;;  %964 = vst [vmem:[#allocation9 + $0x80] sm:$0xff] %v516_v36  ;;  %v438_v37 = vpop.f32.mrb[2].mxu0  ;;  %v518_v38 = vpop.f32.mrb[2].mxu1 }
 0x120   :  { %v1113_v39 = vpack.c.bf16 %v438_v37, %v434_v33  ;;  %v1153_v40 = vpack.c.bf16 %v518_v38, %v514_v34  ;;  %v440_v41 = vpop.f32.mrb[3].mxu0  ;;  %v520_v42 = vpop.f32.mrb[3].mxu1 }
 0x121   :  { %949 = vst [vmem:[#allocation9 + $0x8] sm:$0xff] %v440_v41  ;;  %965 = vst [vmem:[#allocation9 + $0x88] sm:$0xff] %v520_v42 }
 0x122   :  { %1114 = vst [vmem:[#allocation8] sm:$0xff] %v1113_v39   ;;  %1197 = vst [vmem:[#allocation8 + $0x40] sm:$0xff] %v1153_v40  }
 0x125   :  { %v444_v43 = vpop.f32.mrb[4].mxu0  ;;  %v524_v44 = vpop.f32.mrb[4].mxu1 }
 0x126   :  { %v446_v45 = vpop.f32.mrb[5].mxu0  ;;  %v526_v46 = vpop.f32.mrb[5].mxu1 }
 0x127   :  { %950 = vst [vmem:[#allocation9 + $0x10] sm:$0xff] %v446_v45  ;;  %966 = vst [vmem:[#allocation9 + $0x90] sm:$0xff] %v526_v46  ;;  %v448_v47 = vpop.f32.mrb[6].mxu0  ;;  %v528_v48 = vpop.f32.mrb[6].mxu1 }
 0x128   :  { %v1118_v49 = vpack.c.bf16 %v448_v47, %v444_v43  ;;  %v1158_v50 = vpack.c.bf16 %v528_v48, %v524_v44  ;;  %v450_v51 = vpop.f32.mrb[7].mxu0  ;;  %v530_v52 = vpop.f32.mrb[7].mxu1 }
 0x129   :  { %951 = vst [vmem:[#allocation9 + $0x18] sm:$0xff] %v450_v51  ;;  %967 = vst [vmem:[#allocation9 + $0x98] sm:$0xff] %v530_v52 }
 0x12a   :  { %1190 = vst [vmem:[#allocation8 + $0x8] sm:$0xff] %v1118_v49   ;;  %1198 = vst [vmem:[#allocation8 + $0x48] sm:$0xff] %v1158_v50  }
 0x12d   :  { %v454_v53 = vpop.f32.mrb[8].mxu0  ;;  %v534_v54 = vpop.f32.mrb[8].mxu1 }
 0x12e   :  { %v456_v55 = vpop.f32.mrb[9].mxu0  ;;  %v536_v56 = vpop.f32.mrb[9].mxu1 }
 0x12f   :  { %952 = vst [vmem:[#allocation9 + $0x20] sm:$0xff] %v456_v55  ;;  %968 = vst [vmem:[#allocation9 + $0xa0] sm:$0xff] %v536_v56  ;;  %v458_v57 = vpop.f32.mrb[10].mxu0  ;;  %v538_v58 = vpop.f32.mrb[10].mxu1 }
 0x130   :  { %v1123_v59 = vpack.c.bf16 %v458_v57, %v454_v53  ;;  %v1163_v60 = vpack.c.bf16 %v538_v58, %v534_v54  ;;  %v460_v61 = vpop.f32.mrb[11].mxu0  ;;  %v540_v62 = vpop.f32.mrb[11].mxu1 }
 0x131   :  { %953 = vst [vmem:[#allocation9 + $0x28] sm:$0xff] %v460_v61  ;;  %969 = vst [vmem:[#allocation9 + $0xa8] sm:$0xff] %v540_v62 }
 0x132   :  { %1191 = vst [vmem:[#allocation8 + $0x10] sm:$0xff] %v1123_v59   ;;  %1199 = vst [vmem:[#allocation8 + $0x50] sm:$0xff] %v1163_v60  }
 0x135   :  { %v464_v63 = vpop.f32.mrb[12].mxu0  ;;  %v544_v0 = vpop.f32.mrb[12].mxu1 }
 0x136   :  { %v466_v1 = vpop.f32.mrb[13].mxu0  ;;  %v546_v2 = vpop.f32.mrb[13].mxu1 }
 0x137   :  { %954 = vst [vmem:[#allocation9 + $0x30] sm:$0xff] %v466_v1  ;;  %970 = vst [vmem:[#allocation9 + $0xb0] sm:$0xff] %v546_v2  ;;  %v468_v3 = vpop.f32.mrb[14].mxu0  ;;  %v548_v4 = vpop.f32.mrb[14].mxu1 }
 0x138   :  { %v1128_v5 = vpack.c.bf16 %v468_v3, %v464_v63  ;;  %v1168_v6 = vpack.c.bf16 %v548_v4, %v544_v0  ;;  %v470_v7 = vpop.f32.mrb[15].mxu0  ;;  %v550_v8 = vpop.f32.mrb[15].mxu1 }
 0x139   :  { %955 = vst [vmem:[#allocation9 + $0x38] sm:$0xff] %v470_v7  ;;  %971 = vst [vmem:[#allocation9 + $0xb8] sm:$0xff] %v550_v8 }
 0x13a   :  { %1192 = vst [vmem:[#allocation8 + $0x18] sm:$0xff] %v1128_v5   ;;  %1200 = vst [vmem:[#allocation8 + $0x58] sm:$0xff] %v1168_v6  }
 0x13d   :  { %v474_v9 = vpop.f32.mrb[16].mxu0  ;;  %v554_v10 = vpop.f32.mrb[16].mxu1 }
 0x13e   :  { %v476_v11 = vpop.f32.mrb[17].mxu0  ;;  %v556_v12 = vpop.f32.mrb[17].mxu1 }
 0x13f   :  { %956 = vst [vmem:[#allocation9 + $0x40] sm:$0xff] %v476_v11  ;;  %972 = vst [vmem:[#allocation9 + $0xc0] sm:$0xff] %v556_v12  ;;  %v478_v13 = vpop.f32.mrb[18].mxu0  ;;  %v558_v14 = vpop.f32.mrb[18].mxu1 }
 0x140   :  { %v1133_v15 = vpack.c.bf16 %v478_v13, %v474_v9  ;;  %v1173_v16 = vpack.c.bf16 %v558_v14, %v554_v10  ;;  %v480_v17 = vpop.f32.mrb[19].mxu0  ;;  %v560_v18 = vpop.f32.mrb[19].mxu1 }
 0x141   :  { %957 = vst [vmem:[#allocation9 + $0x48] sm:$0xff] %v480_v17  ;;  %973 = vst [vmem:[#allocation9 + $0xc8] sm:$0xff] %v560_v18 }
 0x142   :  { %1193 = vst [vmem:[#allocation8 + $0x20] sm:$0xff] %v1133_v15   ;;  %1201 = vst [vmem:[#allocation8 + $0x60] sm:$0xff] %v1173_v16  }
 0x145   :  { %v484_v19 = vpop.f32.mrb[20].mxu0  ;;  %v564_v20 = vpop.f32.mrb[20].mxu1 }
 0x146   :  { %v486_v21 = vpop.f32.mrb[21].mxu0  ;;  %v566_v22 = vpop.f32.mrb[21].mxu1 }
 0x147   :  { %958 = vst [vmem:[#allocation9 + $0x50] sm:$0xff] %v486_v21  ;;  %974 = vst [vmem:[#allocation9 + $0xd0] sm:$0xff] %v566_v22  ;;  %v488_v23 = vpop.f32.mrb[22].mxu0  ;;  %v568_v24 = vpop.f32.mrb[22].mxu1 }
 0x148   :  { %v1138_v25 = vpack.c.bf16 %v488_v23, %v484_v19  ;;  %v1178_v26 = vpack.c.bf16 %v568_v24, %v564_v20  ;;  %v490_v27 = vpop.f32.mrb[23].mxu0  ;;  %v570_v28 = vpop.f32.mrb[23].mxu1 }
 0x149   :  { %959 = vst [vmem:[#allocation9 + $0x58] sm:$0xff] %v490_v27  ;;  %975 = vst [vmem:[#allocation9 + $0xd8] sm:$0xff] %v570_v28 }
 0x14a   :  { %1194 = vst [vmem:[#allocation8 + $0x28] sm:$0xff] %v1138_v25   ;;  %1202 = vst [vmem:[#allocation8 + $0x68] sm:$0xff] %v1178_v26  }
 0x14d   :  { %v494_v29 = vpop.f32.mrb[24].mxu0  ;;  %v574_v30 = vpop.f32.mrb[24].mxu1 }
 0x14e   :  { %v496_v31 = vpop.f32.mrb[25].mxu0  ;;  %v576_v32 = vpop.f32.mrb[25].mxu1 }
 0x14f   :  { %960 = vst [vmem:[#allocation9 + $0x60] sm:$0xff] %v496_v31  ;;  %976 = vst [vmem:[#allocation9 + $0xe0] sm:$0xff] %v576_v32  ;;  %v498_v33 = vpop.f32.mrb[26].mxu0  ;;  %v578_v34 = vpop.f32.mrb[26].mxu1 }
 0x150   :  { %v1143_v35 = vpack.c.bf16 %v498_v33, %v494_v29  ;;  %v1183_v36 = vpack.c.bf16 %v578_v34, %v574_v30  ;;  %v500_v37 = vpop.f32.mrb[27].mxu0  ;;  %v580_v38 = vpop.f32.mrb[27].mxu1 }
 0x151   :  { %961 = vst [vmem:[#allocation9 + $0x68] sm:$0xff] %v500_v37  ;;  %977 = vst [vmem:[#allocation9 + $0xe8] sm:$0xff] %v580_v38 }
 0x152   :  { %1195 = vst [vmem:[#allocation8 + $0x30] sm:$0xff] %v1143_v35   ;;  %1203 = vst [vmem:[#allocation8 + $0x70] sm:$0xff] %v1183_v36  }
 0x155   :  { %v504_v39 = vpop.f32.mrb[28].mxu0  ;;  %v584_v40 = vpop.f32.mrb[28].mxu1 }
 0x156   :  { %v506_v41 = vpop.f32.mrb[29].mxu0  ;;  %v586_v42 = vpop.f32.mrb[29].mxu1 }
 0x157   :  { %962 = vst [vmem:[#allocation9 + $0x70] sm:$0xff] %v506_v41  ;;  %978 = vst [vmem:[#allocation9 + $0xf0] sm:$0xff] %v586_v42  ;;  %v508_v43 = vpop.f32.mrb[30].mxu0  ;;  %v588_v44 = vpop.f32.mrb[30].mxu1 }
 0x158   :  { %v1148_v45 = vpack.c.bf16 %v508_v43, %v504_v39  ;;  %v1188_v46 = vpack.c.bf16 %v588_v44, %v584_v40  ;;  %v510_v47 = vpop.f32.mrb[31].mxu0  ;;  %v590_v48 = vpop.f32.mrb[31].mxu1 }
 0x159   :  { %963 = vst [vmem:[#allocation9 + $0x78] sm:$0xff] %v510_v47  ;;  %979 = vst [vmem:[#allocation9 + $0xf8] sm:$0xff] %v590_v48 }
 0x15a   :  { %1196 = vst [vmem:[#allocation8 + $0x38] sm:$0xff] %v1148_v45   ;;  %1204 = vst [vmem:[#allocation8 + $0x78] sm:$0xff] %v1188_v46  }
 0x15b   :  { %1325 = shalt.err (!%p1322_p6)
}
 0x15c   :  { %s1326_s18 = scalar_lea.hbm %s1481_s3, 4096 }
 0x15d   :  { %p1327_p7 = scmp.ne.s32.totalorder %s1481_s3, %s1326_s18  ;;  %p1330_p8 = scmp.lt.u32.totalorder %s1326_s18, %s1481_s3 }
 0x15f   :  { %p1332_p9 = pnand %p1330_p8, %p1327_p7 }
 0x161   :  { %1335 = shalt.err (!%p1332_p9)
}
 0x162   :  { %1003 = dma.vmem_to_hbm [thread:$0]  %s998_s12, 4096, %s1481_s3, [#allocation10], %s1370_s0, %s1370_s0, %s1371_s9  }
 0x163   :  { %s1336_s27 = scalar_lea.vmem %s1441_s14, 2048  ;;  %p1341_p11 = scmp.lt.s32.totalorder %s1441_s14, %s1441_s14 }
 0x164   :  { %p1337_p10 = scmp.ne.s32.totalorder %s1441_s14, %s1336_s27  ;;  %p1342_p12 = scmp.lt.s32.totalorder %s1336_s27, %s1336_s27 }
 0x166   :  { %p1343_p13 = por %p1342_p12, %p1341_p11 }
 0x168   :  { %p1344_p0 = pnand %p1343_p13, %p1337_p10 }
 0x16a   :  { %1347 = shalt.err (!%p1344_p0)
}
 0x16b   :  { %s1348_s30 = scalar_lea.hbm %s1480_s2, 2048 }
 0x16c   :  { %p1349_p1 = scmp.ne.s32.totalorder %s1480_s2, %s1348_s30  ;;  %p1352_p2 = scmp.lt.u32.totalorder %s1348_s30, %s1480_s2 }
 0x16e   :  { %p1354_p3 = pnand %p1352_p2, %p1349_p1 }
 0x170   :  { %1357 = shalt.err (!%p1354_p3)
}
 0x171   :  { %991 = dma.vmem_to_hbm [thread:$0]  %s1441_s14, 2048, %s1480_s2, [#allocation5], %s1367_s22, %s1367_s22, %s1368_s23  }
 0x172   :  { %1362 = dma.done.wait [#allocation5], 2048  }
 0x173   :  { %1363 = vsyncadd [#allocation5], 4294965248 }
 0x174   :  { %1364 = dma.done.wait [#allocation10], 4096  }
 0x175   :  { %1365 = vsyncadd [#allocation10], 4294963200 }
 0x176   :  { %1010 = vsyncpa [#allocation4], 1 }
 0x177   :  { %1011 = vsyncpa [#allocation7], 1 }
 0x178   :  { %1012 = vsyncpa [#allocation5], 1 }
 0x179   :  { %1013 = vsyncpa [#allocation10], 1 }

</bundles_post_ra>
